<compile_context>
chip_gen: v7x
topology: tpu7x:2x2x1
jax: 0.10.0
libtpu: 0.0.40
codegen_flags: <defaults>
</compile_context>

<pallas_src>
import functools

import jax
import jax.numpy as jnp
import numpy as np
from jax.experimental import pallas as pl
from jax.experimental.pallas import tpu as pltpu

_EPS = 1e-8  # matches the eps used by F.cosine_similarity


# ---------------------------------------------------------------------------
# VMEM budgeting (generation-aware, conservative fallback).
# ---------------------------------------------------------------------------
def _vmem_limit_bytes():
    """Scoped-VMEM limit to request: ~3/4 of physical, capped, >= 32 MiB."""
    phys = 64 << 20  # conservative default = v7x per-core physical VMEM
    try:
        phys = int(pltpu.get_tpu_info().vmem_capacity_bytes)
    except Exception:
        pass
    return max(32 << 20, min(phys * 3 // 4, 96 << 20))


def _tiled_vmem_estimate(bq, bk, dp, io_bytes):
    streams = 2 * (bq + bk) * dp * io_bytes       # double-buffered xq + xk
    scratch = bq * dp * io_bytes + 4 * bq         # cached q/T tile + denom
    out = 8 * bq                                  # (bq,1) f32 output blocks
    temps = 3 * bq * bk * 4 + 2 * bq * bk         # sim / exp / masked + pred
    return streams + scratch + out + temps


def _small_vmem_estimate(two_n, d, in_bytes):
    return (two_n * d * (in_bytes + 4)            # input + f32 normalized copy
            + 3 * two_n * two_n * 4               # sim, exp, masked
            + 2 * two_n * two_n)                  # diag predicate + slack


def _select_blocks(batch_size, two_n, dp, target_bytes, io_bytes):
    # block_q divides N -> nq = 2N/block_q is even and >= 2, so the parallel
    # qi axis always gives both v7x TensorCores work.
    q_cands = [b for b in (512, 256, 128, 64, 32, 16, 8) if batch_size % b == 0]
    if not q_cands:
        return None, None
    # 1) K-resident: the whole normalized key matrix fits VMEM (its block
    #    index is constant -> fetched once); K HBM traffic drops by nq x.
    for bq in q_cands:
        if _tiled_vmem_estimate(bq, two_n, dp, io_bytes) <= target_bytes:
            return bq, two_n
    # 2) streamed K: prefer a larger block_q (halves total K re-streaming per
    #    doubling) before a larger block_k (only amortizes grid overhead).
    k_cands = [b for b in (512, 256, 128, 64, 32, 16, 8) if two_n % b == 0]
    if not k_cands:
        return None, None
    for min_bk in (128, 8):
        for bq in q_cands:
            for bk in k_cands:
                if bk < min_bk:
                    continue
                if _tiled_vmem_estimate(bq, bk, dp, io_bytes) <= target_bytes:
                    return bq, bk
    return None, None


# ---------------------------------------------------------------------------
# Small path: single fused block.
# ---------------------------------------------------------------------------
def _ntxent_small_kernel(x_ref, loss_ref, *, batch_size, inv_temperature,
                         pos_scale):
    two_n = 2 * batch_size
    x = x_ref[...].astype(jnp.float32)
    sumsq = jnp.sum(x * x, axis=-1, keepdims=True)
    xn = x * jax.lax.rsqrt(jnp.maximum(sumsq, _EPS * _EPS))        # (2N, D)

    # positives[i] = <xn[i], xn[(i+N) mod 2N]>; rows i and i+N share the same
    # value, so only N dot products are needed.
    pos_half_sum = jnp.sum(xn[:batch_size, :] * xn[batch_size:, :])

    # Cosine similarity: contract both operands on the feature axis directly.
    sim = jax.lax.dot_general(
        xn, xn, dimension_numbers=(((1,), (1,)), ((), ())),
        preferred_element_type=jnp.float32)                        # (2N, 2N)

    e = jnp.exp(sim * inv_temperature)
    # Diagonal predicate from a (2N,1) and a (1,2N) iota (no dense int32 pair).
    rows = jax.lax.broadcasted_iota(jnp.int32, (two_n, 1), 0)
    cols = jax.lax.broadcasted_iota(jnp.int32, (1, two_n), 1)
    e = jnp.where(rows == cols, 0.0, e)
    denom = jnp.sum(e, axis=-1, keepdims=True)                     # (2N, 1)
    log_denom_sum = jnp.sum(jnp.log(denom))

    # -log(exp(pos*scale)/denom) == -pos*scale + log(denom)
    loss = (-2.0 * pos_scale * pos_half_sum + log_denom_sum) / two_n
    loss_ref[...] = jnp.full((1, 1), loss, dtype=jnp.float32)


def _ntxent_small(x, batch_size, temperature, sim_temperature, vmem_limit):
    two_n, d = x.shape
    kernel = functools.partial(
        _ntxent_small_kernel,
        batch_size=batch_size,
        inv_temperature=1.0 / float(temperature),
        pos_scale=float(sim_temperature) / float(temperature),
    )
    out = pl.pallas_call(
        kernel,
        out_shape=jax.ShapeDtypeStruct((1, 1), jnp.float32),
        in_specs=[pl.BlockSpec((two_n, d), lambda: (0, 0))],
        out_specs=pl.BlockSpec((1, 1), lambda: (0, 0)),
        compiler_params=pltpu.CompilerParams(vmem_limit_bytes=vmem_limit),
    )(x)
    return out[0, 0]


# ---------------------------------------------------------------------------
# Prologue: normalize every row exactly once (no per-tile re-normalization).
# ---------------------------------------------------------------------------
def _normalize_kernel(x_ref, o_ref):
    x = x_ref[...].astype(jnp.float32)
    sumsq = jnp.sum(x * x, axis=-1, keepdims=True)
    o_ref[...] = (x * jax.lax.rsqrt(jnp.maximum(sumsq, _EPS * _EPS))
                  ).astype(o_ref.dtype)


def _normalize_rows(x, out_dtype, vmem_limit):
    two_n, dp = x.shape
    in_b = x.dtype.itemsize
    out_b = jnp.dtype(out_dtype).itemsize
    target = vmem_limit - (8 << 20)
    br = None
    for b in (1024, 512, 256, 128, 64, 32, 16, 8):
        if two_n % b == 0 and (2 * b * dp * (in_b + out_b) + 3 * b * dp * 4) <= target:
            br = b
            break
    if br is None:  # ragged shapes: plain XLA fallback (tiny O(2N*D) op)
        xf = x.astype(jnp.float32)
        s = jnp.sum(xf * xf, axis=-1, keepdims=True)
        return (xf * jax.lax.rsqrt(jnp.maximum(s, _EPS * _EPS))).astype(out_dtype)
    return pl.pallas_call(
        _normalize_kernel,
        out_shape=jax.ShapeDtypeStruct((two_n, dp), out_dtype),
        grid=(two_n // br,),
        in_specs=[pl.BlockSpec((br, dp), lambda i: (i, 0))],
        out_specs=pl.BlockSpec((br, dp), lambda i: (i, 0)),
        compiler_params=pltpu.CompilerParams(
            dimension_semantics=("parallel",),
            vmem_limit_bytes=vmem_limit),
    )(x)


# ---------------------------------------------------------------------------
# Tiled path: flash-style (TQ, TK) grid over the similarity matrix.
# ---------------------------------------------------------------------------
def _ntxent_tiled_kernel(xq_ref, xk_ref, out_ref, qs_ref, denom_ref,
                         *, inv_temperature, block_q, block_k):
    qi = pl.program_id(0)
    ki = pl.program_id(1)

    @pl.when(ki == 0)
    def _init():
        # Cache the (pre-normalized) query tile once per qi with 1/T folded
        # in: turns the per-step O(TQ*TK) `sim * invT` into O(TQ*D) once.
        qs_ref[...] = (xq_ref[...] * inv_temperature).astype(qs_ref.dtype)
        denom_ref[...] = jnp.zeros_like(denom_ref)

    # sim/T directly; keys are already normalized by the prologue. Contract
    # the feature axes of both operands (no materialized transpose).
    sim_t = jax.lax.dot_general(
        qs_ref[...], xk_ref[...],
        dimension_numbers=(((1,), (1,)), ((), ())),
        preferred_element_type=jnp.float32)                        # (TQ, TK)
    e = jnp.exp(sim_t)

    # Only tiles that intersect the diagonal pay for the exclusion mask; the
    # other (nq*nk - O(nk)) steps take the plain row-sum path.
    q_start = qi * block_q
    k_start = ki * block_k
    hits_diag = jnp.logical_and(q_start < k_start + block_k,
                                k_start < q_start + block_q)

    @pl.when(hits_diag)
    def _masked_sum():
        rows_g = q_start + jax.lax.broadcasted_iota(jnp.int32, (block_q, 1), 0)
        cols_g = k_start + jax.lax.broadcasted_iota(jnp.int32, (1, block_k), 1)
        masked = jnp.where(rows_g == cols_g, 0.0, e)
        denom_ref[...] += jnp.sum(masked, axis=-1, keepdims=True)

    @pl.when(jnp.logical_not(hits_diag))
    def _plain_sum():
        denom_ref[...] += jnp.sum(e, axis=-1, keepdims=True)

    @pl.when(ki == pl.num_programs(1) - 1)
    def _finalize():
        out_ref[...] = jnp.log(denom_ref[...])


def _ntxent_tiled(xn, block_q, block_k, inv_temperature, vmem_limit):
    two_n, dp = xn.shape
    nq = two_n // block_q
    nk = two_n // block_k
    kernel = functools.partial(
        _ntxent_tiled_kernel,
        inv_temperature=float(inv_temperature),
        block_q=block_q, block_k=block_k)
    return pl.pallas_call(
        kernel,
        out_shape=jax.ShapeDtypeStruct((two_n, 1), jnp.float32),
        grid=(nq, nk),
        in_specs=[
            # query tile: block index constant over ki -> fetched once per qi
            pl.BlockSpec((block_q, dp), lambda qi, ki: (qi, 0)),
            # key tile: reduction stream; when block_k == 2N the index map is
            # constant, so the whole key matrix stays VMEM-resident.
            pl.BlockSpec((block_k, dp), lambda qi, ki: (ki, 0)),
        ],
        out_specs=pl.BlockSpec((block_q, 1), lambda qi, ki: (qi, 0)),
        scratch_shapes=[
            pltpu.VMEM((block_q, dp), xn.dtype),     # q/T rows, cached per qi
            pltpu.VMEM((block_q, 1), jnp.float32),   # running sum of exp
        ],
        compiler_params=pltpu.CompilerParams(
            dimension_semantics=("parallel", "arbitrary"),
            vmem_limit_bytes=vmem_limit),
    )(xn, xn)


# ---------------------------------------------------------------------------
# Public wrapper.
# ---------------------------------------------------------------------------
def ntxent_loss(representations, batch_size, temperature=0.1,
                sim_temperature=2.0, *, block_q=None, block_k=None,
                use_bf16_matmul=None):
    two_n, d = representations.shape
    assert two_n == 2 * batch_size, "expected (2*batch_size, feature_dim) input"

    vmem_limit = _vmem_limit_bytes()
    target = vmem_limit - (8 << 20)
    in_bytes = representations.dtype.itemsize

    force_tiled = (block_q is not None) or (block_k is not None)
    if (not force_tiled and two_n <= 512
            and _small_vmem_estimate(two_n, d, in_bytes) <= target):
        return _ntxent_small(representations, batch_size, temperature,
                             sim_temperature, vmem_limit)

    # Pad the feature dim to a lane multiple (zeros change neither norms nor
    # dot products); keeps every vreg lane useful and the MXU contraction full.
    dp = d + ((-d) % 128)
    if use_bf16_matmul is None:
        # bf16 MXU operands only where the matmul dominates (D >= ~1024);
        # smaller D is EUP/VALU-bound and stays bit-close to the f32 reference.
        use_bf16_matmul = dp >= 1024
    mxu_dtype = jnp.bfloat16 if use_bf16_matmul else jnp.float32
    mxu_bytes = jnp.dtype(mxu_dtype).itemsize

    if block_q is None and block_k is None:
        block_q, block_k = _select_blocks(batch_size, two_n, dp, target, mxu_bytes)
    elif block_q is None:
        block_q, _ = _select_blocks(batch_size, two_n, dp, target, mxu_bytes)
    elif block_k is None:
        _, block_k = _select_blocks(batch_size, two_n, dp, target, mxu_bytes)

    ok = (block_q is not None and block_k is not None
          and two_n % block_q == 0 and two_n % block_k == 0
          and block_q % 8 == 0 and (block_k % 8 == 0 or block_k == two_n))
    if not ok:
        # Shapes not cleanly tileable -> fused fallback.
        return _ntxent_small(representations, batch_size, temperature,
                             sim_temperature, vmem_limit)

    x = representations
    if dp != d:
        x = jnp.pad(x, ((0, 0), (0, dp - d)))

    # Prologue: every row normalized exactly once (f32 math, stored in the
    # MXU streaming dtype so bf16 mode also halves the dominant HBM traffic).
    xn = _normalize_rows(x, mxu_dtype, vmem_limit)                  # (2N, Dp)

    # Positive logits: O(2N*D) elementwise work outside the hot kernel (drops
    # the third double-buffered input stream the previous version carried).
    xn32 = xn.astype(jnp.float32)
    pos_half_sum = jnp.sum(xn32[:batch_size] * xn32[batch_size:])

    log_denom = _ntxent_tiled(xn, block_q, block_k,
                              1.0 / float(temperature), vmem_limit)  # (2N, 1)

    pos_scale = float(sim_temperature) / float(temperature)
    # sum_i [-pos_i*scale + log(denom_i)] / 2N ; positives appear twice/pair.
    return (jnp.sum(log_denom) - 2.0 * pos_scale * pos_half_sum) / two_n


# ---------------------------------------------------------------------------
# Pure-JAX reference (mirrors the PyTorch module).
# ---------------------------------------------------------------------------
def _reference_ntxent(representations, batch_size, temperature=0.1,
                      sim_temperature=2.0):
    x = representations.astype(jnp.float32)
    norm = jnp.sqrt(jnp.sum(x * x, axis=-1, keepdims=True))
    xn = x / jnp.maximum(norm, 1e-8)
    sim = xn @ xn.T
    two_n = 2 * batch_size
    sim_ij = jnp.diagonal(sim, offset=batch_size)
    sim_ji = jnp.diagonal(sim, offset=-batch_size)
    positives = jnp.concatenate([sim_ij, sim_ji], axis=0)
    neg_mask = 1.0 - jnp.eye(two_n, dtype=jnp.float32)
    nominator = jnp.exp(positives * sim_temperature / temperature)
    denominator = jnp.sum(neg_mask * jnp.exp(sim / temperature), axis=1)
    loss_partial = -jnp.log(nominator / denominator)
    return jnp.sum(loss_partial) / (2 * batch_size)


if __name__ == "__main__":
    key = jax.random.PRNGKey(0)
    k1, k2, k3 = jax.random.split(key, 3)

    # 1) Small demo shape (single fused block), matches the module defaults.
    bs1, d1 = 4, 32
    reps1 = jax.random.normal(k1, (2 * bs1, d1), dtype=jnp.float32)
    loss1 = jax.block_until_ready(ntxent_loss(reps1, bs1, 0.1, 2.0))
    ref1 = _reference_ntxent(reps1, bs1, 0.1, 2.0)
    np.testing.assert_allclose(np.asarray(loss1), np.asarray(ref1),
                               rtol=1e-4, atol=1e-4)

    # 2) Flash-style tiled path (streamed K, f32 MXU), forced block sizes.
    bs2, d2 = 128, 128
    reps2 = jax.random.normal(k2, (2 * bs2, d2), dtype=jnp.float32)
    loss2 = jax.block_until_ready(
        ntxent_loss(reps2, bs2, 0.1, 2.0, block_q=128, block_k=128))
    ref2 = _reference_ntxent(reps2, bs2, 0.1, 2.0)
    np.testing.assert_allclose(np.asarray(loss2), np.asarray(ref2),
                               rtol=5e-4, atol=5e-4)

    # 3) Auto-tiled path: VMEM-resident normalized K + bf16 MXU operands.
    bs3, d3 = 512, 1024
    reps3 = jax.random.normal(k3, (2 * bs3, d3), dtype=jnp.float32)
    loss3 = jax.block_until_ready(ntxent_loss(reps3, bs3, 0.1, 2.0))
    ref3 = _reference_ntxent(reps3, bs3, 0.1, 2.0)
    np.testing.assert_allclose(np.asarray(loss3), np.asarray(ref3),
                               rtol=1e-2, atol=1e-2)

    print("KERNEL_OK")
</pallas_src>

<mosaic_0001>
module attributes {stable_mosaic.version = 11 : i64} {
  func.func @_ntxent_small_kernel(%arg0: memref<8x32xf32, #tpu.memory_space<vmem>>, %arg1: memref<1x1xf32, #tpu.memory_space<vmem>>) attributes {dimension_semantics = [], scalar_prefetch = 0 : i64, scratch_operands = 0 : i64, tpu.core_type = #tpu.core_type<tc>} {
    %c0 = arith.constant 0 : index
    %c0_0 = arith.constant 0 : index
    %0 = vector.load %arg0[%c0, %c0_0] : memref<8x32xf32, #tpu.memory_space<vmem>>, vector<8x32xf32>
    %1 = arith.mulf %0, %0 : vector<8x32xf32>
    %cst = arith.constant dense<0.000000e+00> : vector<8xf32>
    %2 = vector.multi_reduction <add>, %1, %cst [1] : vector<8x32xf32> to vector<8xf32>
    %3 = vector.shape_cast %2 : vector<8xf32> to vector<8x1xf32>
    %cst_1 = arith.constant 1.000000e-16 : f32
    %4 = vector.broadcast %cst_1 : f32 to vector<8x1xf32>
    %5 = arith.maximumf %3, %4 : vector<8x1xf32>
    %6 = math.rsqrt %5 : vector<8x1xf32>
    %7 = vector.broadcast %6 : vector<8x1xf32> to vector<8x32xf32>
    %8 = arith.mulf %0, %7 : vector<8x32xf32>
    %9 = vector.extract_strided_slice %8 {offsets = [0, 0], sizes = [4, 32], strides = [1, 1]} : vector<8x32xf32> to vector<4x32xf32>
    %10 = vector.extract_strided_slice %8 {offsets = [4, 0], sizes = [4, 32], strides = [1, 1]} : vector<8x32xf32> to vector<4x32xf32>
    %11 = arith.mulf %9, %10 : vector<4x32xf32>
    %12 = vector.shape_cast %11 : vector<4x32xf32> to vector<1x4x32xf32>
    %cst_2 = arith.constant dense<0.000000e+00> : vector<1xf32>
    %13 = vector.multi_reduction <add>, %12, %cst_2 [1, 2] : vector<1x4x32xf32> to vector<1xf32>
    %14 = vector.shape_cast %13 : vector<1xf32> to vector<1x1x1xf32>
    %15 = vector.extract %14[0, 0, 0] : f32 from vector<1x1x1xf32>
    %cst_3 = arith.constant dense<0.000000e+00> : vector<8x8xf32>
    %16 = tpu.matmul %8, %8, %cst_3 {dimension_numbers = #tpu.dot_dimension_numbers<[1], [1], [0], [0], [0, 0, 1, 0], [], []>} : vector<8x32xf32>, vector<8x32xf32>, vector<8x8xf32> -> vector<8x8xf32>
    %cst_4 = arith.constant 1.000000e+01 : f32
    %17 = vector.broadcast %cst_4 : f32 to vector<8x8xf32>
    %18 = arith.mulf %16, %17 : vector<8x8xf32>
    %19 = math.exp %18 : vector<8x8xf32>
    %20 = tpu.iota {dimensions = array<i32: 0>} : vector<8x1xi32>
    %21 = tpu.iota {dimensions = array<i32: 1>} : vector<1x8xi32>
    %22 = vector.broadcast %20 : vector<8x1xi32> to vector<8x8xi32>
    %23 = vector.broadcast %21 : vector<1x8xi32> to vector<8x8xi32>
    %24 = arith.cmpi eq, %22, %23 : vector<8x8xi32>
    %cst_5 = arith.constant 0.000000e+00 : f32
    %25 = vector.broadcast %cst_5 : f32 to vector<8x8xf32>
    %26 = arith.select %24, %25, %19 : vector<8x8xi1>, vector<8x8xf32>
    %cst_6 = arith.constant dense<0.000000e+00> : vector<8xf32>
    %27 = vector.multi_reduction <add>, %26, %cst_6 [1] : vector<8x8xf32> to vector<8xf32>
    %28 = vector.shape_cast %27 : vector<8xf32> to vector<8x1xf32>
    %29 = math.log %28 : vector<8x1xf32>
    %30 = vector.shape_cast %29 : vector<8x1xf32> to vector<1x8x1xf32>
    %cst_7 = arith.constant dense<0.000000e+00> : vector<1xf32>
    %31 = vector.multi_reduction <add>, %30, %cst_7 [1, 2] : vector<1x8x1xf32> to vector<1xf32>
    %32 = vector.shape_cast %31 : vector<1xf32> to vector<1x1x1xf32>
    %33 = vector.extract %32[0, 0, 0] : f32 from vector<1x1x1xf32>
    %cst_8 = arith.constant -4.000000e+01 : f32
    %34 = arith.mulf %cst_8, %15 : f32
    %35 = arith.addf %34, %33 : f32
    %cst_9 = arith.constant 8.000000e+00 : f32
    %36 = arith.divf %35, %cst_9 : f32
    %37 = vector.broadcast %36 : f32 to vector<1x1xf32>
    %c0_10 = arith.constant 0 : index
    %c0_11 = arith.constant 0 : index
    %38 = vector.load %arg1[%c0_10, %c0_11] : memref<1x1xf32, #tpu.memory_space<vmem>>, vector<1x1xf32>
    tpu.vector_store %arg1[%c0_10, %c0_11], %37 {strides = array<i32>} : memref<1x1xf32, #tpu.memory_space<vmem>>, vector<1x1xf32>,
    return
  }
}

</mosaic_0001>

<bundles_post_ra>
// kernel: tpu_custom_call.1
= control target key start
LH: loop header
LB: loop body
LE: loop exit
PB: predicated region body
PF: predicated region fallthrough
CT: control target
= control target key end

     0   :  { %6 = vsyncpa [#allocation3], 0  ;;  %s278_s0 = inlined_call_operand.hbm [shape: f32[8,32], index: 0, kind: input, shape index: {}]   ;;  %s279_s1 = inlined_call_operand.hbm [shape: f32[1,1], index: 1, kind: output, shape index: {}]  }
   0x1   :  { %7 = vsyncpa [#allocation4], 0  ;;  %s237_s6 = smov [#allocation2]   ;;  %s189_s10 = scalar_lea.hbm %s278_s0, 128 }
   0x2   :  { %s14_s7 = sshll.u32 %s237_s6, 4  ;;  %p190_p0 = scmp.ne.s32.totalorder %s278_s0, %s189_s10  ;;  %s15_s7 = int_to_ptr.vmem [resolvable:$true] %s14_s7 }
   0x3   :  { %p193_p1 = scmp.lt.u32.totalorder %s189_s10, %s278_s0 }
   0x5   :  { %p195_p2 = pnand %p193_p1, %p190_p0 }
   0x7   :  { %198 = shalt.err (!%p195_p2)
}
   0x8   :  { %s199_s15 = scalar_lea.vmem %s15_s7, 128  ;;  %p204_p4 = scmp.lt.s32.totalorder %s15_s7, %s15_s7 }
   0x9   :  { %p200_p3 = scmp.ne.s32.totalorder %s15_s7, %s199_s15  ;;  %p205_p5 = scmp.lt.s32.totalorder %s199_s15, %s199_s15 }
   0xb   :  { %p206_p6 = por %p205_p5, %p204_p4 }
   0xd   :  { %p207_p7 = pnand %p206_p6, %p200_p3 }
   0xf   :  { %210 = shalt.err (!%p207_p7)
}
  0x10   :  { %17 = dma.hbm_to_vmem [thread:$0]  %s278_s0, 128, %s15_s7, [#allocation3]  }
  0x11   :  { %233 = dma.done.wait [#allocation3], 128  }
  0x12   :  { %234 = vsyncadd [#allocation3], 4294967168  ;;  %v21_v0 = vld [vmem:[#allocation2] sm:$0xff]  ;;  %vm23_vm0 = vcmask 261120   ;;  %v238_v3 = vmov 0.0   ;;  %vm239_vm1 = vmmov 0   ;;  %v120_v22 = vlaneseq }
  0x13   :  { %v22_v1 = vmul.f32 %v21_v0, %v21_v0  ;;  %170 = vmatprep.subr.mxu0 %v238_v3  ;;  %172 = vmatprep.mubr.msk.f32.mxu0 %vm239_vm1, %v238_v3  ;;  %vm34_vm2 = vcmask 257024   ;;  %vm126_vm4 = vcmask 64512   ;;  %vm132_vm5 = vcmask 7168   ;;  %s240_s21 = smov [#allocation5]  }
  0x14   :  { %v121_v23 = vshrl.u32 %v120_v22, 7  ;;  %v123_v24 = vand.u32 127, %v120_v22  ;;  %s157_s22 = sshll.u32 %s240_s21, 4  ;;  %vm149_vm6 = vcmask 0   ;;  %s158_s22 = int_to_ptr.vmem [resolvable:$true] %s157_s22 }
  0x15   :  { %v24_v2 = vsel %vm23_vm0, %v22_v1, 0.0  ;;  %s211_s24 = scalar_lea.vmem %s158_s22, 16  ;;  %s215_s25 = scalar_lea.vmem %s158_s22, 32 }
  0x16   :  { %25 = vadd.xlane.f32.xlu0 %v24_v2  ;;  %vm124_vm3 = vcmp.eq.s32.totalorder %v121_v23, %v123_v24  ;;  %p212_p8 = scmp.ne.s32.totalorder %s158_s22, %s211_s24  ;;  %p216_p9 = scmp.lt.s32.totalorder %s158_s22, %s158_s22 }
  0x17   :  { %p217_p10 = scmp.lt.s32.totalorder %s215_s25, %s211_s24 }
  0x19   :  { %p218_p11 = por %p217_p10, %p216_p9 }
  0x1b   :  { %p219_p12 = pnand %p218_p11, %p212_p8 }
  0xa3   :  { %v26_v4 = vpop.xlane.xlu0 %25 }
  0xa4   :  { %v27_v5 = vmax.f32 %v26_v4, 1e-16 }
  0xa6   :  { %183 = vrsqrt.f32 %v27_v5 }
  0xb0   :  { %v184_v6 = vpop.eup %183 }
  0xb1   :  { %v29_v7 = vmul.f32 %v184_v6, %v21_v0 }
  0xb3   :  { %171 = vmatpush3.xpose.msk.msra.mxu0 %vm23_vm0, %v29_v7  ;;  %v31_v8 = vrot.slane %v29_v7, 4 }
  0xb5   :  { %v33_v9 = vmul.f32 %v31_v8, %v29_v7 }
  0xb6   :  { %173 = vmatmul.mubr.msk.f32.vlgmr.msra.gmra.mrb[0].mxu0 %vm23_vm0, %v29_v7 }
  0xb7   :  { %v35_v10 = vsel %vm34_vm2, %v33_v9, 0.0 }
  0xb8   :  { %36 = vadd.xlane.f32.xlu1 %v35_v10 }
 0x145   :  { %v37_v11 = vpop.xlane.xlu1 %36 }
 0x146   :  { %v38_v12 = vrot.slane %v37_v11, 4 }
 0x148   :  { %v39_v13 = vadd.f32 %v38_v12, %v37_v11 }
 0x14a   :  { %v40_v14 = vrot.slane %v39_v13, 2 }
 0x14c   :  { %v41_v15 = vadd.f32 %v40_v14, %v39_v13 }
 0x14e   :  { %v42_v16 = vrot.slane %v41_v15, 1 }
 0x150   :  { %v43_v17 = vadd.f32 %v42_v16, %v41_v15 }
 0x152   :  { %175 = vpush %v43_v17 }
 0x183   :  { %s176_s0 = spop %175 }
 0x184   :  { %s143_s18 = smul.f32 -40.0, %s176_s0 }
 0x189   :  { %v113_v18 = vpop.f32.mrb[0].mxu0 }
 0x18a   :  { %v117_v19 = vmul.f32 10.0, %v113_v18  ;;  %v174_v20 = vpop.f32.mrb[1].mxu0 }
 0x18c   :  { %v118_v21 = vmul.f32 1.442695, %v117_v19 }
 0x18e   :  { %185 = vpow2.f32 %v118_v21 }
 0x198   :  { %v186_v25 = vpop.eup %185 }
 0x199   :  { %v125_v26 = vsel %vm124_vm3, 0.0, %v186_v25 }
 0x19a   :  { %v127_v27 = vsel %vm126_vm4, %v125_v26, 0.0 }
 0x19b   :  { %128 = vadd.xlane.f32.xlu0 %v127_v27 }
 0x228   :  { %v129_v28 = vpop.xlane.xlu0 %128 }
 0x229   :  { %187 = vlog2.f32 %v129_v28 }
 0x233   :  { %v188_v29 = vpop.eup %187 }
 0x234   :  { %v131_v30 = vmul.f32 0.6931472, %v188_v29 }
 0x236   :  { %v133_v31 = vsel %vm132_vm5, %v131_v30, 0.0 }
 0x237   :  { %134 = vadd.xlane.f32.xlu1 %v133_v31 }
 0x2c4   :  { %v135_v32 = vpop.xlane.xlu1 %134 }
 0x2c5   :  { %v136_v33 = vrot.slane %v135_v32, 4 }
 0x2c7   :  { %v137_v34 = vadd.f32 %v136_v33, %v135_v32 }
 0x2c9   :  { %v138_v35 = vrot.slane %v137_v34, 2 }
 0x2cb   :  { %v139_v36 = vadd.f32 %v138_v35, %v137_v34 }
 0x2cd   :  { %v140_v37 = vrot.slane %v139_v36, 1 }
 0x2cf   :  { %v141_v38 = vadd.f32 %v140_v37, %v139_v36 }
 0x2d1   :  { %177 = vpush %v141_v38 }
 0x302   :  { %s178_s19 = spop %177 }
 0x303   :  { %s144_s20 = sadd.f32 %s178_s19, %s143_s18 }
 0x305   :  { %s147_s23 = smul.f32 0.125, %s144_s20 }
 0x307   :  { %v148_v39 = vstv %s147_s23 }
 0x308   :  { %150 = vst.msk [vmem:[#allocation5] sm:$0x1] %vm149_vm6, %v148_v39 }
 0x309   :  { %222 = shalt.err (!%p219_p12)
}
 0x30a   :  { %s223_s28 = scalar_lea.hbm %s279_s1, 16 }
 0x30b   :  { %p224_p13 = scmp.ne.s32.totalorder %s279_s1, %s223_s28  ;;  %p227_p0 = scmp.lt.u32.totalorder %s223_s28, %s279_s1 }
 0x30d   :  { %p229_p1 = pnand %p227_p0, %p224_p13 }
 0x30f   :  { %232 = shalt.err (!%p229_p1)
}
 0x310   :  { %160 = dma.vmem_to_hbm [thread:$0]  %s158_s22, 16, %s279_s1, [#allocation4]  }
 0x311   :  { %235 = dma.done.wait [#allocation4], 16  }
 0x312   :  { %236 = vsyncadd [#allocation4], 4294967280 }
 0x313   :  { %164 = vsyncpa [#allocation3], 1 }
 0x314   :  { %165 = vsyncpa [#allocation4], 1 }

</bundles_post_ra>
